<compile_context>
chip_gen: v5e
topology: v5e:2x2
jax: 0.10.0
libtpu: 0.0.40
codegen_flags: <defaults>
</compile_context>

<pallas_src>
import functools

import jax
import jax.numpy as jnp
from jax.experimental import pallas as pl
from jax.experimental.pallas import tpu as pltpu


def _round_up(x: int, m: int) -> int:
    return (x + m - 1) // m * m


def deep_ann_kernel(x_ref, w1_ref, b1_ref, w2_ref, b2_ref, w3_ref, b3_ref, o_ref):
    # x tile: [TM, K_pad] bf16; weights bf16 [in, out]; biases f32 [1, out].
    h1 = jnp.dot(x_ref[...], w1_ref[...], preferred_element_type=jnp.float32) + b1_ref[...]
    h1 = jnp.maximum(h1, 0.0).astype(jnp.bfloat16)

    h2 = jnp.dot(h1, w2_ref[...], preferred_element_type=jnp.float32) + b2_ref[...]
    h2 = jnp.maximum(h2, 0.0).astype(jnp.bfloat16)

    out = jnp.dot(h2, w3_ref[...], preferred_element_type=jnp.float32) + b3_ref[...]
    o_ref[...] = out.astype(o_ref.dtype)


def init_params(key, input_size, num_classes):
    """PyTorch-style nn.Linear init; weights returned as [in, out] float32."""
    in_feats = input_size * 50
    dims = [(in_feats, 256), (256, 128), (128, num_classes)]
    params = []
    for fan_in, fan_out in dims:
        kw, kb, key = jax.random.split(key, 3)
        bound = 1.0 / jnp.sqrt(fan_in)
        w = jax.random.uniform(kw, (fan_in, fan_out), jnp.float32, -bound, bound)
        b = jax.random.uniform(kb, (1, fan_out), jnp.float32, -bound, bound)
        params += [w, b]
    return tuple(params)


def prepare_params(params, input_size, num_classes):
    """One-time weight prep: cast weights to bf16, zero-pad K (fc1 rows) and
    the output lane dim (fc3 cols / bias) to multiples of 128. Biases stay f32."""
    w1, b1, w2, b2, w3, b3 = params
    k = input_size * 50
    k_pad = _round_up(k, 128)
    c_pad = _round_up(max(num_classes, 128), 128)

    w1p = jnp.zeros((k_pad, 256), jnp.bfloat16).at[:k, :].set(w1.astype(jnp.bfloat16))
    w2p = w2.astype(jnp.bfloat16)
    w3p = jnp.zeros((128, c_pad), jnp.bfloat16).at[:, :num_classes].set(w3.astype(jnp.bfloat16))
    b3p = jnp.zeros((1, c_pad), jnp.float32).at[:, :num_classes].set(b3.astype(jnp.float32))
    return (w1p, b1.astype(jnp.float32), w2p, b2.astype(jnp.float32), w3p, b3p)


@functools.partial(jax.jit, static_argnames=("num_classes",))
def deep_ann_forward(x, prepared_params, *, num_classes):
    """x: [B, input_size, 50] (or already flat [B, input_size*50]), f32 or bf16."""
    w1, b1, w2, b2, w3, b3 = prepared_params
    B = x.shape[0]
    k = int(x.size // B)          # true flattened feature count (e.g. 400)
    k_pad = w1.shape[0]           # padded contraction dim (e.g. 512)
    c_pad = w3.shape[1]           # lane-dense padded class dim (>=128)

    # Flatten, cast to bf16, zero-pad features to k_pad.
    x_flat = x.reshape(B, k).astype(jnp.bfloat16)
    if k_pad != k:
        x_flat = jnp.pad(x_flat, ((0, 0), (0, k_pad - k)))

    # Batch tile: small batches round up to 8 (sublane), large batches use 256-row tiles.
    b_pad8 = _round_up(B, 8)
    TM = 256 if b_pad8 >= 256 else b_pad8
    b_pad = _round_up(B, TM)
    if b_pad != B:
        x_flat = jnp.pad(x_flat, ((0, b_pad - B), (0, 0)))
    grid = (b_pad // TM,)

    resident = lambda shape: pl.BlockSpec(shape, lambda i: tuple(0 for _ in shape))

    flops = 2 * b_pad * (k_pad * 256 + 256 * 128 + 128 * c_pad)
    bytes_accessed = (
        2 * (k_pad * 256 + 256 * 128 + 128 * c_pad)        # bf16 weights
        + 4 * (256 + 128 + c_pad)                           # f32 biases
        + b_pad * (k_pad * 2 + c_pad * 4)                   # x in bf16, out in f32
    )

    out_padded = pl.pallas_call(
        deep_ann_kernel,
        out_shape=jax.ShapeDtypeStruct((b_pad, c_pad), jnp.float32),
        grid=grid,
        in_specs=[
            pl.BlockSpec((TM, k_pad), lambda i: (i, 0)),
            resident(w1.shape), resident(b1.shape),
            resident(w2.shape), resident(b2.shape),
            resident(w3.shape), resident(b3.shape),
        ],
        out_specs=pl.BlockSpec((TM, c_pad), lambda i: (i, 0)),
        compiler_params=pltpu.CompilerParams(dimension_semantics=("parallel",)),
        cost_estimate=pl.CostEstimate(
            flops=flops, transcendentals=0, bytes_accessed=bytes_accessed
        ),
    )(x_flat, w1, b1, w2, b2, w3, b3)

    return out_padded[:B, :num_classes]


if __name__ == "__main__":
    key = jax.random.PRNGKey(0)
    batch, input_size, num_classes = 2, 8, 10

    k_x, k_p = jax.random.split(key)
    x = jax.random.normal(k_x, (batch, input_size, 50), jnp.float32)

    params = init_params(k_p, input_size, num_classes)
    prepared = prepare_params(params, input_size, num_classes)

    out = deep_ann_forward(x, prepared, num_classes=num_classes)
    jax.block_until_ready(out)

    # Reference in plain JAX using the same bf16-rounded weights / input (f32 accumulation),
    # matching the kernel's numerics.
    w1, b1, w2, b2, w3, b3 = params
    xf = x.reshape(batch, -1).astype(jnp.bfloat16).astype(jnp.float32)
    w1r = w1.astype(jnp.bfloat16).astype(jnp.float32)
    w2r = w2.astype(jnp.bfloat16).astype(jnp.float32)
    w3r = w3.astype(jnp.bfloat16).astype(jnp.float32)
    h = jnp.maximum(xf @ w1r + b1, 0.0)
    h = h.astype(jnp.bfloat16).astype(jnp.float32)
    h = jnp.maximum(h @ w2r + b2, 0.0)
    h = h.astype(jnp.bfloat16).astype(jnp.float32)
    ref = h @ w3r + b3

    assert out.shape == (batch, num_classes)
    assert jnp.allclose(out, ref, atol=2e-2, rtol=2e-2), float(jnp.max(jnp.abs(out - ref)))

    print("KERNEL_OK")
</pallas_src>

<mosaic_0001>
module attributes {stable_mosaic.version = 11 : i64} {
  func.func @deep_ann_kernel(%arg0: i32, %arg1: memref<8x512xbf16, #tpu.memory_space<vmem>>, %arg2: memref<512x256xbf16, #tpu.memory_space<vmem>>, %arg3: memref<1x256xf32, #tpu.memory_space<vmem>>, %arg4: memref<256x128xbf16, #tpu.memory_space<vmem>>, %arg5: memref<1x128xf32, #tpu.memory_space<vmem>>, %arg6: memref<128x128xbf16, #tpu.memory_space<vmem>>, %arg7: memref<1x128xf32, #tpu.memory_space<vmem>>, %arg8: memref<8x128xf32, #tpu.memory_space<vmem>>) attributes {dimension_semantics = [#tpu.dimension_semantics<parallel>], iteration_bounds = array<i64: 1>, scalar_prefetch = 0 : i64, scratch_operands = 0 : i64, tpu.core_type = #tpu.core_type<tc>, window_params = [{transform_indices = @transform_0, window_bounds = array<i64: 8, 512>}, {pipeline_mode = #tpu.pipeline_mode<synchronous>, transform_indices = @transform_1, window_bounds = array<i64: 512, 256>}, {pipeline_mode = #tpu.pipeline_mode<synchronous>, transform_indices = @transform_2, window_bounds = array<i64: 1, 256>}, {pipeline_mode = #tpu.pipeline_mode<synchronous>, transform_indices = @transform_3, window_bounds = array<i64: 256, 128>}, {pipeline_mode = #tpu.pipeline_mode<synchronous>, transform_indices = @transform_4, window_bounds = array<i64: 1, 128>}, {pipeline_mode = #tpu.pipeline_mode<synchronous>, transform_indices = @transform_5, window_bounds = array<i64: 128, 128>}, {pipeline_mode = #tpu.pipeline_mode<synchronous>, transform_indices = @transform_6, window_bounds = array<i64: 1, 128>}, {transform_indices = @transform_7, window_bounds = array<i64: 8, 128>}]} {
    %c0 = arith.constant 0 : index
    %c0_0 = arith.constant 0 : index
    %0 = vector.load %arg1[%c0, %c0_0] : memref<8x512xbf16, #tpu.memory_space<vmem>>, vector<8x512xbf16>
    %c0_1 = arith.constant 0 : index
    %c0_2 = arith.constant 0 : index
    %1 = vector.load %arg2[%c0_1, %c0_2] : memref<512x256xbf16, #tpu.memory_space<vmem>>, vector<512x256xbf16>
    %cst = arith.constant dense<0.000000e+00> : vector<8x256xf32>
    %2 = tpu.matmul %0, %1, %cst {dimension_numbers = #tpu.dot_dimension_numbers<[1], [0], [0], [1], [0, 0, 1, 1], [], []>} : vector<8x512xbf16>, vector<512x256xbf16>, vector<8x256xf32> -> vector<8x256xf32>
    %c0_3 = arith.constant 0 : index
    %c0_4 = arith.constant 0 : index
    %3 = vector.load %arg3[%c0_3, %c0_4] : memref<1x256xf32, #tpu.memory_space<vmem>>, vector<1x256xf32>
    %4 = vector.broadcast %3 : vector<1x256xf32> to vector<8x256xf32>
    %5 = arith.addf %2, %4 : vector<8x256xf32>
    %cst_5 = arith.constant 0.000000e+00 : f32
    %6 = vector.broadcast %cst_5 : f32 to vector<8x256xf32>
    %7 = arith.maximumf %5, %6 : vector<8x256xf32>
    %8 = arith.truncf %7 : vector<8x256xf32> to vector<8x256xbf16>
    %c0_6 = arith.constant 0 : index
    %c0_7 = arith.constant 0 : index
    %9 = vector.load %arg4[%c0_6, %c0_7] : memref<256x128xbf16, #tpu.memory_space<vmem>>, vector<256x128xbf16>
    %cst_8 = arith.constant dense<0.000000e+00> : vector<8x128xf32>
    %10 = tpu.matmul %8, %9, %cst_8 {dimension_numbers = #tpu.dot_dimension_numbers<[1], [0], [0], [1], [0, 0, 1, 1], [], []>} : vector<8x256xbf16>, vector<256x128xbf16>, vector<8x128xf32> -> vector<8x128xf32>
    %c0_9 = arith.constant 0 : index
    %c0_10 = arith.constant 0 : index
    %11 = vector.load %arg5[%c0_9, %c0_10] : memref<1x128xf32, #tpu.memory_space<vmem>>, vector<1x128xf32>
    %12 = vector.broadcast %11 : vector<1x128xf32> to vector<8x128xf32>
    %13 = arith.addf %10, %12 : vector<8x128xf32>
    %cst_11 = arith.constant 0.000000e+00 : f32
    %14 = vector.broadcast %cst_11 : f32 to vector<8x128xf32>
    %15 = arith.maximumf %13, %14 : vector<8x128xf32>
    %16 = arith.truncf %15 : vector<8x128xf32> to vector<8x128xbf16>
    %c0_12 = arith.constant 0 : index
    %c0_13 = arith.constant 0 : index
    %17 = vector.load %arg6[%c0_12, %c0_13] : memref<128x128xbf16, #tpu.memory_space<vmem>>, vector<128x128xbf16>
    %cst_14 = arith.constant dense<0.000000e+00> : vector<8x128xf32>
    %18 = tpu.matmul %16, %17, %cst_14 {dimension_numbers = #tpu.dot_dimension_numbers<[1], [0], [0], [1], [0, 0, 1, 1], [], []>} : vector<8x128xbf16>, vector<128x128xbf16>, vector<8x128xf32> -> vector<8x128xf32>
    %c0_15 = arith.constant 0 : index
    %c0_16 = arith.constant 0 : index
    %19 = vector.load %arg7[%c0_15, %c0_16] : memref<1x128xf32, #tpu.memory_space<vmem>>, vector<1x128xf32>
    %20 = vector.broadcast %19 : vector<1x128xf32> to vector<8x128xf32>
    %21 = arith.addf %18, %20 : vector<8x128xf32>
    %c0_17 = arith.constant 0 : index
    %c0_18 = arith.constant 0 : index
    %22 = vector.load %arg8[%c0_17, %c0_18] : memref<8x128xf32, #tpu.memory_space<vmem>>, vector<8x128xf32>
    tpu.vector_store %arg8[%c0_17, %c0_18], %21 {strides = array<i32>} : memref<8x128xf32, #tpu.memory_space<vmem>>, vector<8x128xf32>,
    return
  }
  func.func @transform_0(%arg0: i32) -> (i32, i32) {
    %c0_i32 = arith.constant 0 : i32
    %c0_i32_0 = arith.constant 0 : i32
    return %arg0, %c0_i32 : i32, i32
  }
  func.func @transform_1(%arg0: i32) -> (i32, i32) {
    %c0_i32 = arith.constant 0 : i32
    %c0_i32_0 = arith.constant 0 : i32
    %c0_i32_1 = arith.constant 0 : i32
    return %c0_i32, %c0_i32_0 : i32, i32
  }
  func.func @transform_2(%arg0: i32) -> (i32, i32) {
    %c0_i32 = arith.constant 0 : i32
    %c0_i32_0 = arith.constant 0 : i32
    %c0_i32_1 = arith.constant 0 : i32
    return %c0_i32, %c0_i32_0 : i32, i32
  }
  func.func @transform_3(%arg0: i32) -> (i32, i32) {
    %c0_i32 = arith.constant 0 : i32
    %c0_i32_0 = arith.constant 0 : i32
    %c0_i32_1 = arith.constant 0 : i32
    return %c0_i32, %c0_i32_0 : i32, i32
  }
  func.func @transform_4(%arg0: i32) -> (i32, i32) {
    %c0_i32 = arith.constant 0 : i32
    %c0_i32_0 = arith.constant 0 : i32
    %c0_i32_1 = arith.constant 0 : i32
    return %c0_i32, %c0_i32_0 : i32, i32
  }
  func.func @transform_5(%arg0: i32) -> (i32, i32) {
    %c0_i32 = arith.constant 0 : i32
    %c0_i32_0 = arith.constant 0 : i32
    %c0_i32_1 = arith.constant 0 : i32
    return %c0_i32, %c0_i32_0 : i32, i32
  }
  func.func @transform_6(%arg0: i32) -> (i32, i32) {
    %c0_i32 = arith.constant 0 : i32
    %c0_i32_0 = arith.constant 0 : i32
    %c0_i32_1 = arith.constant 0 : i32
    return %c0_i32, %c0_i32_0 : i32, i32
  }
  func.func @transform_7(%arg0: i32) -> (i32, i32) {
    %c0_i32 = arith.constant 0 : i32
    %c0_i32_0 = arith.constant 0 : i32
    return %arg0, %c0_i32 : i32, i32
  }
}

</mosaic_0001>

<bundles_post_ra>
// kernel: deep_ann_forward.1
= control target key start
LH: loop header
LB: loop body
LE: loop exit
PB: predicated region body
PF: predicated region fallthrough
CT: control target
= control target key end

     0   :  { %12 = vsyncpa [#allocation3], 0  ;;  %s1450_s0 = inlined_call_operand.vmem [shape: bf16[8,512], index: 0, kind: input, shape index: {}]   ;;  %s1451_s1 = inlined_call_operand.hbm [shape: bf16[512,256], index: 1, kind: input, shape index: {}]   ;;  %s1452_s2 = inlined_call_operand.vmem [shape: f32[1,256], index: 2, kind: input, shape index: {}]   ;;  %s1453_s3 = inlined_call_operand.hbm [shape: bf16[256,128], index: 3, kind: input, shape index: {}]   ;;  %s1454_s4 = inlined_call_operand.vmem [shape: f32[1,128], index: 4, kind: input, shape index: {}]   ;;  %s1455_s5 = inlined_call_operand.hbm [shape: bf16[128,128], index: 5, kind: input, shape index: {}]   ;;  %s1456_s6 = inlined_call_operand.vmem [shape: f32[1,128], index: 6, kind: input, shape index: {}]   ;;  %s1457_s7 = inlined_call_operand.vmem [shape: f32[8,128], index: 7, kind: output, shape index: {}]  }
   0x1   :  { %13 = vsyncpa [#allocation5], 0  ;;  %s35_s26 = sshll.u32 %s1453_s3, 4  ;;  %s1360_s27 = smov [#allocation4]   ;;  %s36_s26 = int_to_ptr.hbm [resolvable:$true] %s35_s26 }
   0x2   :  { %s37_s28 = sshll.u32 %s1360_s27, 4  ;;  %s20_s8 = sshll.u32 %s1451_s1, 4  ;;  %s38_s28 = int_to_ptr.vmem [resolvable:$true] %s37_s28  ;;  %s21_s8 = int_to_ptr.hbm [resolvable:$true] %s20_s8 }
   0x3   :  { %s1361_s9 = smov 64   ;;  %s1362_s10 = smov 4  }
   0x4   :  { %43 = dma.hbm_to_vmem [thread:$0]  %s36_s26, 2048, %s38_s28, [#allocation5], %s1361_s9, %s1361_s9, %s1362_s10  }
   0x5   :  { %s1363_s11 = smov [#allocation2]   ;;  %s1364_s13 = smov 128  }
   0x6   :  { %s22_s12 = sshll.u32 %s1363_s11, 4  ;;  %s1365_s14 = smov 8   ;;  %s23_s12 = int_to_ptr.vmem [resolvable:$true] %s22_s12 }
   0x7   :  { %28 = dma.hbm_to_vmem [thread:$0]  %s21_s8, 8192, %s23_s12, [#allocation3], %s1364_s13, %s1364_s13, %s1365_s14  }
   0x8   :  { %s50_s16 = sshll.u32 %s1455_s5, 4  ;;  %s1366_s17 = smov [#allocation6]   ;;  %s51_s16 = int_to_ptr.hbm [resolvable:$true] %s50_s16 }
   0x9   :  { %s52_s18 = sshll.u32 %s1366_s17, 4  ;;  %s53_s18 = int_to_ptr.vmem [resolvable:$true] %s52_s18 }
   0xa   :  { %58 = dma.hbm_to_vmem [thread:$0]  %s51_s16, 1024, %s53_s18, [#allocation5], %s1361_s9, %s1361_s9, %s1362_s10  }
   0xb   :  { %1356 = dma.done.wait [#allocation3], 8192  }
   0xc   :  { %1357 = vsyncadd [#allocation3], 4294959104 }
   0xd   :  { %1358 = dma.done.wait [#allocation5], 3072  }
   0xe   :  { %1359 = vsyncadd [#allocation5], 4294964224  ;;  %v893_v0 = vld [vmem:[#allocation2 + $0x70] sm:$0xf]  ;;  %v1202_v1 = vld [vmem:[#allocation2 + $0x74] sm:$0xf0] }
   0xf   :  { %v957_v2 = vld [vmem:[#allocation2 + $0xf0] sm:$0xf]  ;;  %v894_v3 = vor.u32 %v1202_v1, %v893_v0  ;;  %v1218_v4 = vld [vmem:[#allocation2 + $0xf4] sm:$0xf0]  ;;  %v885_v11 = vld [vmem:[#allocation2 + $0x60] sm:$0xf] }
  0x10   :  { %v1021_v5 = vld [vmem:[#allocation2 + $0x170] sm:$0xf]  ;;  %v1234_v6 = vld [vmem:[#allocation2 + $0x174] sm:$0xf0]  ;;  %v958_v7 = vor.u32 %v1218_v4, %v957_v2  ;;  %v1200_v13 = vld [vmem:[#allocation2 + $0x64] sm:$0xf0] }
  0x11   :  { %v1022_v8 = vor.u32 %v1234_v6, %v1021_v5  ;;  %v1085_v9 = vld [vmem:[#allocation2 + $0x1f0] sm:$0xf]  ;;  %v1250_v10 = vld [vmem:[#allocation2 + $0x1f4] sm:$0xf0]  ;;  %479 = vmatpush.bf16.msra.mxu0 %v894_v3  ;;  %v949_v14 = vld [vmem:[#allocation2 + $0xe0] sm:$0xf]  ;;  %v886_v16 = vor.u32 %v1200_v13, %v885_v11 }
  0x12   :  { %v1086_v12 = vor.u32 %v1250_v10, %v1085_v9  ;;  %v1216_v15 = vld [vmem:[#allocation2 + $0xe4] sm:$0xf0]  ;;  %492 = vmatpush.bf16.msra.mxu1 %v958_v7  ;;  %v1013_v18 = vld [vmem:[#allocation2 + $0x160] sm:$0xf]  ;;  %v877_v23 = vld [vmem:[#allocation2 + $0x50] sm:$0xf] }
  0x13   :  { %505 = vmatpush.bf16.msra.mxu2 %v1022_v8  ;;  %v950_v17 = vor.u32 %v1216_v15, %v949_v14  ;;  %v1232_v19 = vld [vmem:[#allocation2 + $0x164] sm:$0xf0]  ;;  %v1077_v20 = vld [vmem:[#allocation2 + $0x1e0] sm:$0xf]  ;;  %v1198_v24 = vld [vmem:[#allocation2 + $0x54] sm:$0xf0] }
  0x14   :  { %518 = vmatpush.bf16.msra.mxu3 %v1086_v12  ;;  %v1014_v21 = vor.u32 %v1232_v19, %v1013_v18  ;;  %v1248_v22 = vld [vmem:[#allocation2 + $0x1e4] sm:$0xf0]  ;;  %v941_v26 = vld [vmem:[#allocation2 + $0xd0] sm:$0xf]  ;;  %v1214_v27 = vld [vmem:[#allocation2 + $0xd4] sm:$0xf0]  ;;  %v878_v29 = vor.u32 %v1198_v24, %v877_v23 }
  0x15   :  { %v1078_v25 = vor.u32 %v1248_v22, %v1077_v20  ;;  %v1005_v28 = vld [vmem:[#allocation2 + $0x150] sm:$0xf]  ;;  %480 = vmatpush.bf16.msra.mxu0 %v886_v16  ;;  %v1230_v30 = vld [vmem:[#allocation2 + $0x154] sm:$0xf0]  ;;  %v942_v33 = vor.u32 %v1214_v27, %v941_v26  ;;  %v869_v35 = vld [vmem:[#allocation2 + $0x40] sm:$0xf] }
  0x16   :  { %v1069_v31 = vld [vmem:[#allocation2 + $0x1d0] sm:$0xf]  ;;  %v1246_v32 = vld [vmem:[#allocation2 + $0x1d4] sm:$0xf0]  ;;  %493 = vmatpush.bf16.msra.mxu1 %v950_v17  ;;  %v1006_v34 = vor.u32 %v1230_v30, %v1005_v28  ;;  %v1196_v36 = vld [vmem:[#allocation2 + $0x44] sm:$0xf0] }
  0x17   :  { %506 = vmatpush.bf16.msra.mxu2 %v1014_v21  ;;  %v933_v37 = vld [vmem:[#allocation2 + $0xc0] sm:$0xf]  ;;  %v1070_v38 = vor.u32 %v1246_v32, %v1069_v31  ;;  %v1212_v39 = vld [vmem:[#allocation2 + $0xc4] sm:$0xf0]  ;;  %v870_v44 = vor.u32 %v1196_v36, %v869_v35  ;;  %v861_v47 = vld [vmem:[#allocation2 + $0x30] sm:$0xf] }
  0x18   :  { %519 = vmatpush.bf16.msra.mxu3 %v1078_v25  ;;  %v997_v40 = vld [vmem:[#allocation2 + $0x140] sm:$0xf]  ;;  %v1228_v41 = vld [vmem:[#allocation2 + $0x144] sm:$0xf0]  ;;  %v934_v45 = vor.u32 %v1212_v39, %v933_v37  ;;  %v1194_v48 = vld [vmem:[#allocation2 + $0x34] sm:$0xf0] }
  0x19   :  { %v1061_v42 = vld [vmem:[#allocation2 + $0x1c0] sm:$0xf]  ;;  %v1244_v43 = vld [vmem:[#allocation2 + $0x1c4] sm:$0xf0]  ;;  %481 = vmatpush.bf16.msra.mxu0 %v878_v29  ;;  %v998_v46 = vor.u32 %v1228_v41, %v997_v40  ;;  %v925_v49 = vld [vmem:[#allocation2 + $0xb0] sm:$0xf]  ;;  %v862_v56 = vor.u32 %v1194_v48, %v861_v47 }
  0x1a   :  { %494 = vmatpush.bf16.msra.mxu1 %v942_v33  ;;  %v1062_v50 = vor.u32 %v1244_v43, %v1061_v42  ;;  %v1210_v51 = vld [vmem:[#allocation2 + $0xb4] sm:$0xf0]  ;;  %v989_v52 = vld [vmem:[#allocation2 + $0x130] sm:$0xf]  ;;  %v853_v59 = vld [vmem:[#allocation2 + $0x20] sm:$0xf] }
  0x1b   :  { %507 = vmatpush.bf16.msra.mxu2 %v1006_v34  ;;  %v1226_v53 = vld [vmem:[#allocation2 + $0x134] sm:$0xf0]  ;;  %v1053_v54 = vld [vmem:[#allocation2 + $0x1b0] sm:$0xf]  ;;  %v926_v57 = vor.u32 %v1210_v51, %v925_v49  ;;  %v1192_v60 = vld [vmem:[#allocation2 + $0x24] sm:$0xf0] }
  0x1c   :  { %520 = vmatpush.bf16.msra.mxu3 %v1070_v38  ;;  %v1242_v55 = vld [vmem:[#allocation2 + $0x1b4] sm:$0xf0]  ;;  %v990_v58 = vor.u32 %v1226_v53, %v989_v52  ;;  %v917_v61 = vld [vmem:[#allocation2 + $0xa0] sm:$0xf]  ;;  %v1208_v63 = vld [vmem:[#allocation2 + $0xa4] sm:$0xf0]  ;;  %v854_v4 = vor.u32 %v1192_v60, %v853_v59 }
  0x1d   :  { %482 = vmatpush.bf16.msra.mxu0 %v870_v44  ;;  %v1054_v62 = vor.u32 %v1242_v55, %v1053_v54  ;;  %v981_v0 = vld [vmem:[#allocation2 + $0x120] sm:$0xf]  ;;  %v1224_v1 = vld [vmem:[#allocation2 + $0x124] sm:$0xf0]  ;;  %v918_v5 = vor.u32 %v1208_v63, %v917_v61  ;;  %v845_v7 = vld [vmem:[#allocation2 + $0x10] sm:$0xf] }
  0x1e   :  { %495 = vmatpush.bf16.msra.mxu1 %v934_v45  ;;  %v1045_v2 = vld [vmem:[#allocation2 + $0x1a0] sm:$0xf]  ;;  %v1240_v3 = vld [vmem:[#allocation2 + $0x1a4] sm:$0xf0]  ;;  %v982_v6 = vor.u32 %v1224_v1, %v981_v0  ;;  %v1190_v8 = vld [vmem:[#allocation2 + $0x14] sm:$0xf0] }
  0x1f   :  { %508 = vmatpush.bf16.msra.mxu2 %v998_v46  ;;  %v909_v9 = vld [vmem:[#allocation2 + $0x90] sm:$0xf]  ;;  %v1046_v10 = vor.u32 %v1240_v3, %v1045_v2  ;;  %v1206_v11 = vld [vmem:[#allocation2 + $0x94] sm:$0xf0]  ;;  %v846_v16 = vor.u32 %v1190_v8, %v845_v7  ;;  %v837_v17 = vld [vmem:[#allocation2] sm:$0xf] }
  0x20   :  { %521 = vmatpush.bf16.msra.mxu3 %v1062_v50  ;;  %v973_v12 = vld [vmem:[#allocation2 + $0x110] sm:$0xf]  ;;  %v1222_v13 = vld [vmem:[#allocation2 + $0x114] sm:$0xf0]  ;;  %v1188_v18 = vld [vmem:[#allocation2 + $0x4] sm:$0xf0]  ;;  %v910_v20 = vor.u32 %v1206_v11, %v909_v9 }
  0x21   :  { %483 = vmatpush.bf16.msra.mxu0 %v862_v56  ;;  %v1037_v14 = vld [vmem:[#allocation2 + $0x190] sm:$0xf]  ;;  %v1238_v15 = vld [vmem:[#allocation2 + $0x194] sm:$0xf0]  ;;  %v901_v19 = vld [vmem:[#allocation2 + $0x80] sm:$0xf]  ;;  %v974_v21 = vor.u32 %v1222_v13, %v973_v12  ;;  %v838_v32 = vor.u32 %v1188_v18, %v837_v17 }
  0x22   :  { %496 = vmatpush.bf16.msra.mxu1 %v926_v57  ;;  %v1204_v22 = vld [vmem:[#allocation2 + $0x84] sm:$0xf0]  ;;  %v965_v23 = vld [vmem:[#allocation2 + $0x100] sm:$0xf]  ;;  %v1038_v25 = vor.u32 %v1238_v15, %v1037_v14  ;;  %v1201_v28 = vld [vmem:[#allocation2 + $0x74] sm:$0xf] }
  0x23   :  { %509 = vmatpush.bf16.msra.mxu2 %v990_v58  ;;  %v1220_v24 = vld [vmem:[#allocation2 + $0x104] sm:$0xf0]  ;;  %v1029_v26 = vld [vmem:[#allocation2 + $0x180] sm:$0xf]  ;;  %v895_v29 = vld [vmem:[#allocation2 + $0x78] sm:$0xf0]  ;;  %v902_v37 = vor.u32 %v1204_v22, %v901_v19 }
  0x24   :  { %522 = vmatpush.bf16.msra.mxu3 %v1054_v62  ;;  %v1236_v27 = vld [vmem:[#allocation2 + $0x184] sm:$0xf0]  ;;  %v1217_v30 = vld [vmem:[#allocation2 + $0xf4] sm:$0xf]  ;;  %v959_v33 = vld [vmem:[#allocation2 + $0xf8] sm:$0xf0]  ;;  %v966_v38 = vor.u32 %v1220_v24, %v965_v23  ;;  %v898_v43 = vor.u32 %v1201_v28, %v895_v29 }
  0x25   :  { %484 = vmatpush.bf16.msra.mxu0 %v854_v4  ;;  %v74_v31 = vld [vmem:[%s1450_s0 + $0x8] sm:$0xff]  ;;  %v1233_v34 = vld [vmem:[#allocation2 + $0x174] sm:$0xf]  ;;  %v1023_v35 = vld [vmem:[#allocation2 + $0x178] sm:$0xf0]  ;;  %v1030_v42 = vor.u32 %v1236_v27, %v1029_v26  ;;  %v962_v45 = vor.u32 %v1217_v30, %v959_v33 }
  0x26   :  { %497 = vmatpush.bf16.msra.mxu1 %v918_v5  ;;  %v149_v36 = vunpack.c.l.b16 %v74_v31  ;;  %v1249_v39 = vld [vmem:[#allocation2 + $0x1f4] sm:$0xf]  ;;  %v1087_v40 = vld [vmem:[#allocation2 + $0x1f8] sm:$0xf0]  ;;  %v150_v41 = vunpack.c.h.b16 %v74_v31  ;;  %v73_v44 = vld [vmem:[%s1450_s0] sm:$0xff]  ;;  %v1026_v46 = vor.u32 %v1233_v34, %v1023_v35 }
  0x27   :  { %510 = vmatpush.bf16.msra.mxu2 %v982_v6  ;;  %v1199_v47 = vld [vmem:[#allocation2 + $0x64] sm:$0xf]  ;;  %v887_v48 = vld [vmem:[#allocation2 + $0x68] sm:$0xf0]  ;;  %v147_v50 = vunpack.c.l.b16 %v73_v44  ;;  %v148_v51 = vunpack.c.h.b16 %v73_v44  ;;  %v1090_v52 = vor.u32 %v1249_v39, %v1087_v40  ;;  %v1197_v1 = vld [vmem:[#allocation2 + $0x54] sm:$0xf] }
  0x28   :  { %523 = vmatpush.bf16.msra.mxu3 %v1046_v10  ;;  %v1215_v49 = vld [vmem:[#allocation2 + $0xe4] sm:$0xf]  ;;  %v951_v53 = vld [vmem:[#allocation2 + $0xe8] sm:$0xf0]  ;;  %v1422_v56 = vpack.c.b16 %v149_v36, %v149_v36  ;;  %v1426_v60 = vpack.c.b16 %v150_v41, %v150_v41  ;;  %v890_v61 = vor.u32 %v1199_v47, %v887_v48  ;;  %v879_v2 = vld [vmem:[#allocation2 + $0x58] sm:$0xf0] }
  0x29   :  { %485 = vmatpush.bf16.msra.mxu0 %v846_v16  ;;  %v1231_v54 = vld [vmem:[#allocation2 + $0x164] sm:$0xf]  ;;  %v1015_v55 = vld [vmem:[#allocation2 + $0x168] sm:$0xf0]  ;;  %v1424_v59 = vpack.c.b16 %v147_v50, %v147_v50  ;;  %v1428_v62 = vpack.c.b16 %v148_v51, %v148_v51  ;;  %v954_v63 = vor.u32 %v1215_v49, %v951_v53  ;;  %v1213_v3 = vld [vmem:[#allocation2 + $0xd4] sm:$0xf]  ;;  %v882_v10 = vor.u32 %v1197_v1, %v879_v2 }
  0x2a   :  { %498 = vmatpush.bf16.msra.mxu1 %v910_v20  ;;  %v1247_v57 = vld [vmem:[#allocation2 + $0x1e4] sm:$0xf]  ;;  %v1079_v58 = vld [vmem:[#allocation2 + $0x1e8] sm:$0xf0]  ;;  %v1018_v0 = vor.u32 %v1231_v54, %v1015_v55  ;;  %v943_v5 = vld [vmem:[#allocation2 + $0xd8] sm:$0xf0] }
  0x2b   :  { %511 = vmatpush.bf16.msra.mxu2 %v974_v21  ;;  %v1082_v4 = vor.u32 %v1247_v57, %v1079_v58  ;;  %v1229_v6 = vld [vmem:[#allocation2 + $0x154] sm:$0xf]  ;;  %v1007_v7 = vld [vmem:[#allocation2 + $0x158] sm:$0xf0]  ;;  %v946_v11 = vor.u32 %v1213_v3, %v943_v5  ;;  %v1195_v13 = vld [vmem:[#allocation2 + $0x44] sm:$0xf] }
  0x2c   :  { %524 = vmatpush.bf16.msra.mxu3 %v1038_v25  ;;  %v1245_v8 = vld [vmem:[#allocation2 + $0x1d4] sm:$0xf]  ;;  %v1071_v9 = vld [vmem:[#allocation2 + $0x1d8] sm:$0xf0]  ;;  %v1010_v12 = vor.u32 %v1229_v6, %v1007_v7  ;;  %v871_v14 = vld [vmem:[#allocation2 + $0x48] sm:$0xf0] }
  0x2d   :  { %486 = vmatpush.bf16.msra.mxu0 %v838_v32  ;;  %v1211_v15 = vld [vmem:[#allocation2 + $0xc4] sm:$0xf]  ;;  %v1074_v16 = vor.u32 %v1245_v8, %v1071_v9  ;;  %v935_v17 = vld [vmem:[#allocation2 + $0xc8] sm:$0xf0]  ;;  %v874_v22 = vor.u32 %v1195_v13, %v871_v14  ;;  %v1193_v25 = vld [vmem:[#allocation2 + $0x34] sm:$0xf] }
  0x2e   :  { %499 = vmatpush.bf16.msra.mxu1 %v902_v37  ;;  %v1227_v18 = vld [vmem:[#allocation2 + $0x144] sm:$0xf]  ;;  %v999_v19 = vld [vmem:[#allocation2 + $0x148] sm:$0xf0]  ;;  %v938_v23 = vor.u32 %v1211_v15, %v935_v17  ;;  %v863_v26 = vld [vmem:[#allocation2 + $0x38] sm:$0xf0] }
  0x2f   :  { %512 = vmatpush.bf16.msra.mxu2 %v966_v38  ;;  %v1243_v20 = vld [vmem:[#allocation2 + $0x1c4] sm:$0xf]  ;;  %v1063_v21 = vld [vmem:[#allocation2 + $0x1c8] sm:$0xf0]  ;;  %v1002_v24 = vor.u32 %v1227_v18, %v999_v19  ;;  %v1209_v27 = vld [vmem:[#allocation2 + $0xb4] sm:$0xf]  ;;  %v866_v34 = vor.u32 %v1193_v25, %v863_v26 }
  0x30   :  { %525 = vmatpush.bf16.msra.mxu3 %v1030_v42  ;;  %487 = vmatmul.bf16.vlgmr.msra.gmra.mxu0 %v1424_v59  ;;  %v1066_v28 = vor.u32 %v1243_v20, %v1063_v21  ;;  %v927_v29 = vld [vmem:[#allocation2 + $0xb8] sm:$0xf0]  ;;  %v1225_v30 = vld [vmem:[#allocation2 + $0x134] sm:$0xf]  ;;  %v1191_v37 = vld [vmem:[#allocation2 + $0x24] sm:$0xf] }
  0x31   :  { %531 = vmatpush.bf16.msrb.mxu0 %v898_v43  ;;  %500 = vmatmul.bf16.vlgmr.msra.gmra.mxu1 %v1428_v62  ;;  %v991_v31 = vld [vmem:[#allocation2 + $0x138] sm:$0xf0]  ;;  %v1241_v32 = vld [vmem:[#allocation2 + $0x1b4] sm:$0xf]  ;;  %v930_v35 = vor.u32 %v1209_v27, %v927_v29  ;;  %v855_v38 = vld [vmem:[#allocation2 + $0x28] sm:$0xf0] }
  0x32   :  { %544 = vmatpush.bf16.msrb.mxu1 %v962_v45  ;;  %513 = vmatmul.bf16.vlgmr.msra.gmra.mxu2 %v1422_v56  ;;  %v1055_v33 = vld [vmem:[#allocation2 + $0x1b8] sm:$0xf0]  ;;  %v994_v36 = vor.u32 %v1225_v30, %v991_v31  ;;  %v1207_v39 = vld [vmem:[#allocation2 + $0xa4] sm:$0xf]  ;;  %v919_v41 = vld [vmem:[#allocation2 + $0xa8] sm:$0xf0] }
  0x33   :  { %557 = vmatpush.bf16.msrb.mxu2 %v1026_v46  ;;  %526 = vmatmul.bf16.vlgmr.msra.gmra.mxu3 %v1426_v60  ;;  %v1058_v40 = vor.u32 %v1241_v32, %v1055_v33  ;;  %v1223_v42 = vld [vmem:[#allocation2 + $0x124] sm:$0xf]  ;;  %v983_v43 = vld [vmem:[#allocation2 + $0x128] sm:$0xf0]  ;;  %v858_v46 = vor.u32 %v1191_v37, %v855_v38  ;;  %v922_v47 = vor.u32 %v1207_v39, %v919_v41  ;;  %v1189_v49 = vld [vmem:[#allocation2 + $0x14] sm:$0xf] }
  0x34   :  { %570 = vmatpush.bf16.msrb.mxu3 %v1090_v52  ;;  %v1239_v44 = vld [vmem:[#allocation2 + $0x1a4] sm:$0xf]  ;;  %v1047_v45 = vld [vmem:[#allocation2 + $0x1a8] sm:$0xf0]  ;;  %v986_v48 = vor.u32 %v1223_v42, %v983_v43  ;;  %v847_v50 = vld [vmem:[#allocation2 + $0x18] sm:$0xf0] }
  0x35   :  { %532 = vmatpush.bf16.msrb.mxu0 %v890_v61  ;;  %v1205_v51 = vld [vmem:[#allocation2 + $0x94] sm:$0xf]  ;;  %v1050_v52 = vor.u32 %v1239_v44, %v1047_v45  ;;  %v911_v53 = vld [vmem:[#allocation2 + $0x98] sm:$0xf0]  ;;  %v850_v61 = vor.u32 %v1189_v49, %v847_v50  ;;  %v1187_v1 = vld [vmem:[#allocation2 + $0x4] sm:$0xf] }
  0x36   :  { %545 = vmatpush.bf16.msrb.mxu1 %v954_v63  ;;  %v1221_v54 = vld [vmem:[#allocation2 + $0x114] sm:$0xf]  ;;  %v975_v55 = vld [vmem:[#allocation2 + $0x118] sm:$0xf0]  ;;  %v914_v63 = vor.u32 %v1205_v51, %v911_v53  ;;  %v839_v2 = vld [vmem:[#allocation2 + $0x8] sm:$0xf0] }
  0x37   :  { %558 = vmatpush.bf16.msrb.mxu2 %v1018_v0  ;;  %v1237_v57 = vld [vmem:[#allocation2 + $0x194] sm:$0xf]  ;;  %v1039_v58 = vld [vmem:[#allocation2 + $0x198] sm:$0xf0]  ;;  %v978_v0 = vor.u32 %v1221_v54, %v975_v55  ;;  %v1203_v3 = vld [vmem:[#allocation2 + $0x84] sm:$0xf] }
  0x38   :  { %571 = vmatpush.bf16.msrb.mxu3 %v1082_v4  ;;  %v1042_v4 = vor.u32 %v1237_v57, %v1039_v58  ;;  %v903_v5 = vld [vmem:[#allocation2 + $0x88] sm:$0xf0]  ;;  %v1219_v6 = vld [vmem:[#allocation2 + $0x104] sm:$0xf]  ;;  %v1258_v14 = vld [vmem:[#allocation4 + $0x38] sm:$0xff] }
  0x39   :  { %533 = vmatpush.bf16.msrb.mxu0 %v882_v10  ;;  %v967_v7 = vld [vmem:[#allocation2 + $0x108] sm:$0xf0]  ;;  %v1235_v8 = vld [vmem:[#allocation2 + $0x184] sm:$0xf]  ;;  %v842_v10 = vor.u32 %v1187_v1, %v839_v2  ;;  %v1257_v15 = vld [vmem:[#allocation4 + $0x30] sm:$0xff] }
  0x3a   :  { %546 = vmatpush.bf16.msrb.mxu1 %v946_v11  ;;  %v1031_v9 = vld [vmem:[#allocation2 + $0x188] sm:$0xf0]  ;;  %v906_v11 = vor.u32 %v1203_v3, %v903_v5  ;;  %v1255_v17 = vld [vmem:[#allocation4 + $0x20] sm:$0xff]  ;;  %v1254_v18 = vld [vmem:[#allocation4 + $0x18] sm:$0xff] }
  0x3b   :  { %559 = vmatpush.bf16.msrb.mxu2 %v1010_v12  ;;  %v970_v12 = vor.u32 %v1219_v6, %v967_v7  ;;  %v1034_v13 = vor.u32 %v1235_v8, %v1031_v9  ;;  %v1253_v19 = vld [vmem:[#allocation4 + $0x10] sm:$0xff]  ;;  %v1252_v20 = vld [vmem:[#allocation4 + $0x8] sm:$0xff]  ;;  %v1266_v21 = vld [vmem:[#allocation4 + $0x78] sm:$0xff] }
  0x3c   :  { %572 = vmatpush.bf16.msrb.mxu3 %v1074_v16  ;;  %v1256_v16 = vld [vmem:[#allocation4 + $0x28] sm:$0xff]  ;;  %v1261_v25 = vld [vmem:[#allocation4 + $0x50] sm:$0xff]  ;;  %v1274_v58 = vld [vmem:[#allocation6 + $0x38] sm:$0xff] }
  0x3d   :  { %534 = vmatpush.bf16.msrb.mxu0 %v874_v22  ;;  %v1265_v22 = vld [vmem:[#allocation4 + $0x70] sm:$0xff]  ;;  %v1260_v30 = vld [vmem:[#allocation4 + $0x48] sm:$0xff]  ;;  %v1270_v1 = vld [vmem:[#allocation6 + $0x18] sm:$0xff] }
  0x3e   :  { %547 = vmatpush.bf16.msrb.mxu1 %v938_v23  ;;  %v1262_v23 = vld [vmem:[#allocation4 + $0x58] sm:$0xff]  ;;  %v1269_v2 = vld [vmem:[#allocation6 + $0x10] sm:$0xff]  ;;  %v1268_v3 = vld [vmem:[#allocation6 + $0x8] sm:$0xff] }
  0x3f   :  { %560 = vmatpush.bf16.msrb.mxu2 %v1002_v24  ;;  %v1267_v5 = vld [vmem:[#allocation6] sm:$0xff] }
  0x40   :  { %573 = vmatpush.bf16.msrb.mxu3 %v1066_v28  ;;  %v1282_v7 = vld [vmem:[%s1454_s4] ss:$0 sm:$0xff] }
  0x41   :  { %535 = vmatpush.bf16.msrb.mxu0 %v866_v34 }
  0x42   :  { %548 = vmatpush.bf16.msrb.mxu1 %v930_v35 }
  0x43   :  { %561 = vmatpush.bf16.msrb.mxu2 %v994_v36  ;;  %v1259_v36 = vld [vmem:[#allocation4 + $0x40] sm:$0xff] }
  0x44   :  { %574 = vmatpush.bf16.msrb.mxu3 %v1058_v40 }
  0x45   :  { %536 = vmatpush.bf16.msrb.mxu0 %v858_v46 }
  0x46   :  { %549 = vmatpush.bf16.msrb.mxu1 %v922_v47 }
  0x47   :  { %562 = vmatpush.bf16.msrb.mxu2 %v986_v48 }
  0x48   :  { %575 = vmatpush.bf16.msrb.mxu3 %v1050_v52 }
  0x49   :  { %537 = vmatpush.bf16.msrb.mxu0 %v850_v61  ;;  %v1273_v61 = vld [vmem:[#allocation6 + $0x30] sm:$0xff] }
  0x4a   :  { %550 = vmatpush.bf16.msrb.mxu1 %v914_v63  ;;  %v1272_v63 = vld [vmem:[#allocation6 + $0x28] sm:$0xff] }
  0x4b   :  { %563 = vmatpush.bf16.msrb.mxu2 %v978_v0  ;;  %v1271_v0 = vld [vmem:[#allocation6 + $0x20] sm:$0xff] }
  0x4c   :  { %576 = vmatpush.bf16.msrb.mxu3 %v1042_v4 }
  0x4d   :  { %538 = vmatpush.bf16.msrb.mxu0 %v842_v10 }
  0x4e   :  { %551 = vmatpush.bf16.msrb.mxu1 %v906_v11 }
  0x4f   :  { %564 = vmatpush.bf16.msrb.mxu2 %v970_v12 }
  0x50   :  { %577 = vmatpush.bf16.msrb.mxu3 %v1034_v13  ;;  %539 = vmatmul.bf16.vlgmr.msrb.gmra.mxu0 %v1424_v59  ;;  %v1251_v59 = vld [vmem:[#allocation4] sm:$0xff] }
  0x51   :  { %719 = vmatpush.bf16.msra.mxu0 %v1258_v14  ;;  %552 = vmatmul.bf16.vlgmr.msrb.gmra.mxu1 %v1428_v62  ;;  %v139_v62 = vld [vmem:[%s1452_s2] sm:$0x3] }
  0x52   :  { %565 = vmatmul.bf16.vlgmr.msrb.gmra.mxu2 %v1422_v56  ;;  %732 = vmatpush.bf16.msra.mxu1 %v1266_v21  ;;  %v1264_v56 = vld [vmem:[#allocation4 + $0x68] sm:$0xff]  ;;  %v141_v24 = vperm.slane %v139_v62, 0  ;;  %v142_v42 = vperm.slane %v139_v62, 1  ;;  %v1283_v14 = vld [vmem:[%s1456_s6] ss:$0 sm:$0xff] }
  0x53   :  { %578 = vmatmul.bf16.vlgmr.msrb.gmra.mxu3 %v1426_v60  ;;  %v1263_v60 = vld [vmem:[#allocation4 + $0x60] sm:$0xff]  ;;  %815 = vmatpush.bf16.msra.mxu2 %v1274_v58 }
  0x55   :  { %720 = vmatpush.bf16.msra.mxu0 %v1257_v15 }
  0x56   :  { %733 = vmatpush.bf16.msra.mxu1 %v1265_v22 }
  0x57   :  { %816 = vmatpush.bf16.msra.mxu2 %v1273_v61 }
  0x59   :  { %721 = vmatpush.bf16.msra.mxu0 %v1256_v16 }
  0x5a   :  { %734 = vmatpush.bf16.msra.mxu1 %v1264_v56 }
  0x5b   :  { %817 = vmatpush.bf16.msra.mxu2 %v1272_v63 }
  0x5d   :  { %722 = vmatpush.bf16.msra.mxu0 %v1255_v17 }
  0x5e   :  { %735 = vmatpush.bf16.msra.mxu1 %v1263_v60 }
  0x5f   :  { %818 = vmatpush.bf16.msra.mxu2 %v1271_v0 }
  0x61   :  { %723 = vmatpush.bf16.msra.mxu0 %v1254_v18 }
  0x62   :  { %736 = vmatpush.bf16.msra.mxu1 %v1262_v23 }
  0x63   :  { %819 = vmatpush.bf16.msra.mxu2 %v1270_v1 }
  0x65   :  { %724 = vmatpush.bf16.msra.mxu0 %v1253_v19 }
  0x66   :  { %737 = vmatpush.bf16.msra.mxu1 %v1261_v25 }
  0x67   :  { %820 = vmatpush.bf16.msra.mxu2 %v1269_v2 }
  0x69   :  { %725 = vmatpush.bf16.msra.mxu0 %v1252_v20 }
  0x6a   :  { %738 = vmatpush.bf16.msra.mxu1 %v1260_v30 }
  0x6b   :  { %821 = vmatpush.bf16.msra.mxu2 %v1268_v3 }
  0x6d   :  { %726 = vmatpush.bf16.msra.mxu0 %v1251_v59 }
  0x6e   :  { %739 = vmatpush.bf16.msra.mxu1 %v1259_v36 }
  0x6f   :  { %822 = vmatpush.bf16.msra.mxu2 %v1267_v5 }
  0xad   :  { %v488_v26 = vpop.f32.mrf.mxu0 }
  0xae   :  { %v489_v27 = vadd.f32 %v488_v26, %v141_v24  ;;  %v501_v28 = vpop.f32.mrf.mxu1 }
  0xb0   :  { %v502_v29 = vadd.f32 %v501_v28, %v489_v27 }
  0xb5   :  { %v514_v31 = vpop.f32.mrf.mxu2  ;;  %v490_v35 = vpop.f32.mrf.mxu0 }
  0xb6   :  { %v515_v32 = vadd.f32 %v514_v31, %v502_v29  ;;  %v527_v33 = vpop.f32.mrf.mxu3  ;;  %v503_v37 = vpop.f32.mrf.mxu1 }
  0xb8   :  { %v528_v34 = vadd.f32 %v527_v33, %v515_v32 }
  0xba   :  { %v583_v38 = vmax.f32 %v528_v34, 0.0 }
  0xbc   :  { %v585_v39 = vpack.c.bf16 %v583_v38, %v583_v38 }
  0xbd   :  { %v516_v40 = vpop.f32.mrf.mxu2 }
  0xbe   :  { %727 = vmatmul.bf16.vlgmr.msra.gmra.mxu0 %v585_v39  ;;  %v529_v41 = vpop.f32.mrf.mxu3 }
  0xcd   :  { %v540_v43 = vpop.f32.mrf.mxu0 }
  0xce   :  { %v541_v44 = vadd.f32 %v540_v43, %v142_v42  ;;  %v553_v45 = vpop.f32.mrf.mxu1 }
  0xd0   :  { %v554_v46 = vadd.f32 %v553_v45, %v541_v44 }
  0xd5   :  { %v566_v47 = vpop.f32.mrf.mxu2  ;;  %v542_v50 = vpop.f32.mrf.mxu0 }
  0xd6   :  { %v567_v48 = vadd.f32 %v566_v47, %v554_v46  ;;  %v579_v49 = vpop.f32.mrf.mxu3  ;;  %v555_v51 = vpop.f32.mrf.mxu1 }
  0xd8   :  { %v580_v52 = vadd.f32 %v579_v49, %v567_v48 }
  0xda   :  { %v584_v53 = vmax.f32 %v580_v52, 0.0 }
  0xdc   :  { %v586_v54 = vpack.c.bf16 %v584_v53, %v584_v53 }
  0xdd   :  { %v568_v55 = vpop.f32.mrf.mxu2 }
  0xde   :  { %v581_v57 = vpop.f32.mrf.mxu3  ;;  %740 = vmatmul.bf16.vlgmr.msra.gmra.mxu1 %v586_v54 }
 0x13b   :  { %v728_v4 = vpop.f32.mrf.mxu0 }
 0x13c   :  { %v729_v8 = vadd.f32 %v1282_v7, %v728_v4 }
 0x143   :  { %v730_v6 = vpop.f32.mrf.mxu0 }
 0x15b   :  { %v741_v9 = vpop.f32.mrf.mxu1 }
 0x15c   :  { %v742_v10 = vadd.f32 %v741_v9, %v729_v8 }
 0x15e   :  { %v745_v11 = vmax.f32 %v742_v10, 0.0 }
 0x160   :  { %v746_v12 = vpack.c.bf16 %v745_v11, %v745_v11 }
 0x162   :  { %823 = vmatmul.bf16.vlgmr.msra.gmra.mxu2 %v746_v12 }
 0x163   :  { %v743_v13 = vpop.f32.mrf.mxu1 }
 0x1e5   :  { %v824_v15 = vpop.f32.mrf.mxu2 }
 0x1e6   :  { %v825_v16 = vadd.f32 %v1283_v14, %v824_v15 }
 0x1e8   :  { %828 = vst [vmem:[%s1457_s7] sm:$0xff] %v825_v16 }
 0x1ed   :  { %v826_v17 = vpop.f32.mrf.mxu2 }
 0x1ee   :  { %833 = vsyncpa [#allocation3], 1 }
 0x1ef   :  { %834 = vsyncpa [#allocation5], 1 }

</bundles_post_ra>
